<compile_context>
chip_gen: v7x
topology: tpu7x:2x2x1
jax: 0.10.0
libtpu: 0.0.40
codegen_flags: <defaults>
</compile_context>

<pallas_src>
import functools

import jax
import jax.numpy as jnp
from jax.experimental import pallas as pl
from jax.experimental.pallas import tpu as pltpu


def _fused_mlp_kernel(x_ref, *refs, num_layers):
    """Fused forward: h = x; for each layer: h = act(h @ W + b); write final h.

    refs layout: (w_0, b_0, w_1, b_1, ..., w_{L-1}, b_{L-1}, out_ref)
    Hidden layers use ReLU, the last layer uses Sigmoid (matches SimpleNet).
    """
    out_ref = refs[-1]
    h = x_ref[...]
    for i in range(num_layers):
        w = refs[2 * i][...]          # (Din_i, Dout_i)
        b = refs[2 * i + 1][...]      # (1, Dout_i) -> broadcasts over batch
        h = jnp.dot(h, w, preferred_element_type=jnp.float32) + b
        if i == num_layers - 1:
            h = jax.nn.sigmoid(h)     # final activation
        else:
            h = jnp.maximum(h, 0.0)   # ReLU
    out_ref[...] = h.astype(out_ref.dtype)


def simple_net_forward(x, params):
    """x: (B, n_x) float32, params: list of (W (Din, Dout), b (Dout,)).

    Returns (B, n_y) float32.  Single fused Pallas kernel, whole arrays in VMEM.
    """
    B = x.shape[0]
    n_y = params[-1][0].shape[1]
    num_layers = len(params)

    flat_inputs = []
    for w, b in params:
        flat_inputs.append(w)
        flat_inputs.append(b.reshape(1, -1))  # (1, Dout) row for broadcast

    kernel = functools.partial(_fused_mlp_kernel, num_layers=num_layers)
    vmem_spec = pl.BlockSpec(memory_space=pltpu.MemorySpace.VMEM)

    return pl.pallas_call(
        kernel,
        out_shape=jax.ShapeDtypeStruct((B, n_y), jnp.float32),
        in_specs=[vmem_spec] * (1 + len(flat_inputs)),
        out_specs=vmem_spec,
    )(x, *flat_inputs)


# TODO(synk): if batch or layer widths are ever scaled up, add a "parallel" batch grid
# axis (TB multiple of 8, ideally 128-256) with weights as resident full-array blocks,
# and re-derive VMEM budget for v7x's 64 MiB / 2-TC megacore.


def init_params(key, n_x, n_y, n_hs):
    """Deterministic init mirroring nn.Linear default (uniform +/- 1/sqrt(fan_in))."""
    sizes = [n_x] + list(n_hs) + [n_y]
    params = []
    for i in range(len(sizes) - 1):
        fan_in, fan_out = sizes[i], sizes[i + 1]
        key, kw, kb = jax.random.split(key, 3)
        bound = 1.0 / (fan_in ** 0.5)
        w = jax.random.uniform(kw, (fan_in, fan_out), jnp.float32, -bound, bound)
        b = jax.random.uniform(kb, (fan_out,), jnp.float32, -bound, bound)
        params.append((w, b))
    return params


def reference_forward(x, params):
    h = x
    n_layers = len(params)
    for i, (w, b) in enumerate(params):
        h = h @ w + b
        if i == n_layers - 1:
            h = jax.nn.sigmoid(h)
        else:
            h = jnp.maximum(h, 0.0)
    return h


if __name__ == "__main__":
    key = jax.random.PRNGKey(0)
    n_x, n_y, n_hs = 32, 8, [64, 48]
    batch = 8

    kparam, kx = jax.random.split(key)
    params = init_params(kparam, n_x, n_y, n_hs)
    x = jax.random.normal(kx, (batch, n_x), jnp.float32)

    y = simple_net_forward(x, params)
    jax.block_until_ready(y)

    y_ref = reference_forward(x, params)
    assert y.shape == (batch, n_y)
    assert jnp.allclose(y, y_ref, atol=1e-5, rtol=1e-5)

    print("KERNEL_OK")
</pallas_src>

<mosaic_0001>
module attributes {stable_mosaic.version = 11 : i64} {
  func.func @_fused_mlp_kernel(%arg0: memref<8x32xf32, #tpu.memory_space<vmem>>, %arg1: memref<32x64xf32, #tpu.memory_space<vmem>>, %arg2: memref<1x64xf32, #tpu.memory_space<vmem>>, %arg3: memref<64x48xf32, #tpu.memory_space<vmem>>, %arg4: memref<1x48xf32, #tpu.memory_space<vmem>>, %arg5: memref<48x8xf32, #tpu.memory_space<vmem>>, %arg6: memref<1x8xf32, #tpu.memory_space<vmem>>, %arg7: memref<8x8xf32, #tpu.memory_space<vmem>>) attributes {dimension_semantics = [], scalar_prefetch = 0 : i64, scratch_operands = 0 : i64, tpu.core_type = #tpu.core_type<tc>} {
    %c0 = arith.constant 0 : index
    %c0_0 = arith.constant 0 : index
    %0 = vector.load %arg0[%c0, %c0_0] : memref<8x32xf32, #tpu.memory_space<vmem>>, vector<8x32xf32>
    %c0_1 = arith.constant 0 : index
    %c0_2 = arith.constant 0 : index
    %1 = vector.load %arg1[%c0_1, %c0_2] : memref<32x64xf32, #tpu.memory_space<vmem>>, vector<32x64xf32>
    %c0_3 = arith.constant 0 : index
    %c0_4 = arith.constant 0 : index
    %2 = vector.load %arg2[%c0_3, %c0_4] : memref<1x64xf32, #tpu.memory_space<vmem>>, vector<1x64xf32>
    %cst = arith.constant dense<0.000000e+00> : vector<8x64xf32>
    %3 = tpu.matmul %0, %1, %cst {dimension_numbers = #tpu.dot_dimension_numbers<[1], [0], [0], [1], [0, 0, 1, 1], [], []>} : vector<8x32xf32>, vector<32x64xf32>, vector<8x64xf32> -> vector<8x64xf32>
    %4 = vector.broadcast %2 : vector<1x64xf32> to vector<8x64xf32>
    %5 = arith.addf %3, %4 : vector<8x64xf32>
    %cst_5 = arith.constant 0.000000e+00 : f32
    %6 = vector.broadcast %cst_5 : f32 to vector<8x64xf32>
    %7 = arith.maximumf %5, %6 : vector<8x64xf32>
    %c0_6 = arith.constant 0 : index
    %c0_7 = arith.constant 0 : index
    %8 = vector.load %arg3[%c0_6, %c0_7] : memref<64x48xf32, #tpu.memory_space<vmem>>, vector<64x48xf32>
    %c0_8 = arith.constant 0 : index
    %c0_9 = arith.constant 0 : index
    %9 = vector.load %arg4[%c0_8, %c0_9] : memref<1x48xf32, #tpu.memory_space<vmem>>, vector<1x48xf32>
    %cst_10 = arith.constant dense<0.000000e+00> : vector<8x48xf32>
    %10 = tpu.matmul %7, %8, %cst_10 {dimension_numbers = #tpu.dot_dimension_numbers<[1], [0], [0], [1], [0, 0, 1, 1], [], []>} : vector<8x64xf32>, vector<64x48xf32>, vector<8x48xf32> -> vector<8x48xf32>
    %11 = vector.broadcast %9 : vector<1x48xf32> to vector<8x48xf32>
    %12 = arith.addf %10, %11 : vector<8x48xf32>
    %cst_11 = arith.constant 0.000000e+00 : f32
    %13 = vector.broadcast %cst_11 : f32 to vector<8x48xf32>
    %14 = arith.maximumf %12, %13 : vector<8x48xf32>
    %c0_12 = arith.constant 0 : index
    %c0_13 = arith.constant 0 : index
    %15 = vector.load %arg5[%c0_12, %c0_13] : memref<48x8xf32, #tpu.memory_space<vmem>>, vector<48x8xf32>
    %c0_14 = arith.constant 0 : index
    %c0_15 = arith.constant 0 : index
    %16 = vector.load %arg6[%c0_14, %c0_15] : memref<1x8xf32, #tpu.memory_space<vmem>>, vector<1x8xf32>
    %cst_16 = arith.constant dense<0.000000e+00> : vector<8x8xf32>
    %17 = tpu.matmul %14, %15, %cst_16 {dimension_numbers = #tpu.dot_dimension_numbers<[1], [0], [0], [1], [0, 0, 1, 1], [], []>} : vector<8x48xf32>, vector<48x8xf32>, vector<8x8xf32> -> vector<8x8xf32>
    %18 = vector.broadcast %16 : vector<1x8xf32> to vector<8x8xf32>
    %19 = arith.addf %17, %18 : vector<8x8xf32>
    %20 = arith.negf %19 : vector<8x8xf32>
    %21 = math.exp %20 : vector<8x8xf32>
    %cst_17 = arith.constant 1.000000e+00 : f32
    %22 = vector.broadcast %cst_17 : f32 to vector<8x8xf32>
    %23 = arith.addf %22, %21 : vector<8x8xf32>
    %24 = arith.divf %22, %23 : vector<8x8xf32>
    %c0_18 = arith.constant 0 : index
    %c0_19 = arith.constant 0 : index
    %25 = vector.load %arg7[%c0_18, %c0_19] : memref<8x8xf32, #tpu.memory_space<vmem>>, vector<8x8xf32>
    tpu.vector_store %arg7[%c0_18, %c0_19], %24 {strides = array<i32>} : memref<8x8xf32, #tpu.memory_space<vmem>>, vector<8x8xf32>,
    return
  }
}

</mosaic_0001>

<bundles_post_ra>
// kernel: tpu_custom_call.1
= control target key start
LH: loop header
LB: loop body
LE: loop exit
PB: predicated region body
PF: predicated region fallthrough
CT: control target
= control target key end

     0   :  { %v445_v3 = vmov 0.0|0.0   ;;  %vm446_vm0 = vmmov 0   ;;  %v447_v6 = vmov 0.0   ;;  %s570_s0 = inlined_call_operand.vmem [shape: f32[8,32], index: 0, kind: input, shape index: {}]   ;;  %s571_s1 = inlined_call_operand.vmem [shape: f32[32,64], index: 1, kind: input, shape index: {}]   ;;  %s572_s2 = inlined_call_operand.vmem [shape: f32[1,64], index: 2, kind: input, shape index: {}]   ;;  %s573_s3 = inlined_call_operand.vmem [shape: f32[64,48], index: 3, kind: input, shape index: {}]   ;;  %s574_s4 = inlined_call_operand.vmem [shape: f32[1,48], index: 4, kind: input, shape index: {}]   ;;  %s575_s5 = inlined_call_operand.vmem [shape: f32[48,8], index: 5, kind: input, shape index: {}]   ;;  %s576_s6 = inlined_call_operand.vmem [shape: f32[1,8], index: 6, kind: input, shape index: {}]   ;;  %s577_s7 = inlined_call_operand.hbm [shape: f32[8,8], index: 7, kind: output, shape index: {}]  }
   0x1   :  { %v28_v0 = vld [vmem:[%s571_s1] sm:$0xff]  ;;  %v29_v1 = vld [vmem:[%s571_s1 + $0x8] sm:$0xff]  ;;  %v30_v2 = vld [vmem:[%s571_s1 + $0x10] sm:$0xff]  ;;  %386 = vmatprep.subr.bf16.mxu0 %v445_v3  ;;  %349 = vmatprep.mubr.msk.f32.mxu0 %vm446_vm0, %v447_v6 }
   0x2   :  { %v387_v4 = vpack.c.bf16 %v29_v1, %v28_v0  ;;  %v31_v5 = vld [vmem:[%s571_s1 + $0x18] sm:$0xff]  ;;  %v114_v7 = vld [vmem:[%s573_s3] sm:$0xff]  ;;  %392 = vmatprep.subr.bf16.mxu1 %v445_v3  ;;  %v115_v8 = vld [vmem:[%s573_s3 + $0x8] sm:$0xff]  ;;  %368 = vmatprep.mubr.msk.f32.mxu1 %vm446_vm0, %v447_v6 }
   0x3   :  { %v116_v9 = vld [vmem:[%s573_s3 + $0x10] sm:$0xff]  ;;  %v117_v10 = vld [vmem:[%s573_s3 + $0x18] sm:$0xff]  ;;  %v390_v11 = vpack.c.bf16 %v31_v5, %v30_v2  ;;  %v393_v12 = vpack.c.bf16 %v115_v8, %v114_v7 }
   0x4   :  { %388 = vmatpush3.bf16.msra.mxu0 %v387_v4 }
   0x5   :  { %389 = vmatprep.subr.bf16.mxu0 %v445_v3 }
   0x6   :  { %12 = vsyncpa [#allocation3], 0  ;;  %394 = vmatpush3.bf16.msra.mxu1 %v393_v12  ;;  %v396_v13 = vpack.c.bf16 %v117_v10, %v116_v9  ;;  %v118_v14 = vld [vmem:[%s573_s3 + $0x20] sm:$0xff]  ;;  %v119_v15 = vld [vmem:[%s573_s3 + $0x28] sm:$0xff]  ;;  %vm39_vm1 = vcmask 261120   ;;  %vm129_vm2 = vcmask 523264  }
   0x7   :  { %395 = vmatprep.subr.bf16.mxu1 %v445_v3  ;;  %v27_v16 = vld [vmem:[%s570_s0] sm:$0xff]  ;;  %v399_v17 = vpack.c.bf16 %v119_v15, %v118_v14  ;;  %v120_v18 = vld [vmem:[%s573_s3 + $0x30] sm:$0xff]  ;;  %v121_v19 = vld [vmem:[%s573_s3 + $0x38] sm:$0xff]  ;;  %vm217_vm3 = vcmask 392192   ;;  %vm297_vm4 = vcmask 64512  }
   0x8   :  { %391 = vmatpush3.bf16.msra.mxu0 %v390_v11  ;;  %v402_v20 = vpack.c.bf16 %v121_v19, %v120_v18  ;;  %v204_v21 = vld [vmem:[%s575_s5] sm:$0xff]  ;;  %v205_v22 = vld [vmem:[%s575_s5 + $0x8] sm:$0xff]  ;;  %v206_v23 = vld [vmem:[%s575_s5 + $0x10] sm:$0xff] }
   0x9   :  { %404 = vmatprep.subr.bf16.mxu0 %v445_v3  ;;  %v405_v24 = vpack.c.bf16 %v205_v22, %v204_v21  ;;  %v207_v25 = vld [vmem:[%s575_s5 + $0x18] sm:$0xff]  ;;  %v313_v27 = vld [vmem:[%s572_s2] ss:$0 sm:$0xff]  ;;  %v209_v33 = vld [vmem:[%s575_s5 + $0x28] sm:$0xff] }
   0xa   :  { %397 = vmatpush3.bf16.msra.mxu1 %v396_v13  ;;  %v408_v26 = vpack.c.bf16 %v207_v25, %v206_v23  ;;  %v208_v32 = vld [vmem:[%s575_s5 + $0x20] sm:$0xff]  ;;  %s448_s5 = smov [#allocation2]  }
   0xb   :  { %350 = vmatmul.mubr.msk.f32.vlgmr.msra.gmra.mrb[0].mxu0 %vm39_vm1, %v27_v16  ;;  %398 = vmatprep.subr.bf16.mxu1 %v445_v3  ;;  %v411_v34 = vpack.c.bf16 %v209_v33, %v208_v32  ;;  %v315_v35 = vld [vmem:[%s574_s4] ss:$0 sm:$0xff]  ;;  %s305_s4 = sshll.u32 %s448_s5, 4  ;;  %s306_s4 = int_to_ptr.vmem [resolvable:$true] %s305_s4 }
   0xc   :  { %383 = vmatprep.mubr.msk.f32.mxu0 %vm446_vm0, %v447_v6  ;;  %406 = vmatpush3.bf16.msra.mxu0 %v405_v24  ;;  %v317_v40 = vld [vmem:[%s576_s6] ss:$0 sm:$0xff]  ;;  %s421_s17 = scalar_lea.vmem %s306_s4, 128  ;;  %p426_p1 = scmp.lt.s32.totalorder %s306_s4, %s306_s4 }
   0xd   :  { %407 = vmatprep.subr.bf16.mxu0 %v445_v3  ;;  %p422_p0 = scmp.ne.s32.totalorder %s306_s4, %s421_s17  ;;  %p427_p2 = scmp.lt.s32.totalorder %s421_s17, %s421_s17 }
   0xe   :  { %400 = vmatpush3.bf16.msra.mxu1 %v399_v17 }
   0xf   :  { %401 = vmatprep.subr.bf16.mxu1 %v445_v3  ;;  %p428_p3 = por %p427_p2, %p426_p1 }
  0x10   :  { %409 = vmatpush3.bf16.msra.mxu0 %v408_v26 }
  0x11   :  { %410 = vmatprep.subr.bf16.mxu0 %v445_v3  ;;  %p429_p4 = pnand %p428_p3, %p422_p0 }
  0x12   :  { %403 = vmatpush3.bf16.msra.mxu1 %v402_v20 }
  0x14   :  { %412 = vmatpush3.bf16.msra.mxu0 %v411_v34 }
  0xde   :  { %v109_v28 = vpop.f32.mrb[0].mxu0 }
  0xdf   :  { %v110_v29 = vadd.f32 %v313_v27, %v109_v28  ;;  %v351_v30 = vpop.f32.mrb[1].mxu0 }
  0xe1   :  { %v113_v31 = vmax.f32 %v110_v29, 0.0 }
  0xe3   :  { %369 = vmatmul.mubr.msk.f32.vlgmr.msra.gmra.mrb[0].mxu1 %vm129_vm2, %v113_v31 }
 0x1b6   :  { %v199_v36 = vpop.f32.mrb[0].mxu1 }
 0x1b7   :  { %v200_v37 = vadd.f32 %v315_v35, %v199_v36  ;;  %v370_v38 = vpop.f32.mrb[1].mxu1 }
 0x1b9   :  { %v203_v39 = vmax.f32 %v200_v37, 0.0 }
 0x1bb   :  { %384 = vmatmul.mubr.msk.f32.vlgmr.msra.gmra.mrb[2].mxu0 %vm217_vm3, %v203_v39 }
 0x28e   :  { %v287_v41 = vpop.f32.mrb[2].mxu0 }
 0x28f   :  { %v288_v42 = vadd.f32 %v317_v40, %v287_v41  ;;  %v385_v43 = vpop.f32.mrb[3].mxu0 }
 0x291   :  { %v319_v44 = vmul.f32 -1.442695, %v288_v42 }
 0x293   :  { %417 = vpow2.f32 %v319_v44 }
 0x29d   :  { %v418_v45 = vpop.eup %417 }
 0x29e   :  { %v294_v46 = vadd.f32 1.0, %v418_v45 }
 0x2a0   :  { %419 = vrcp.f32 %v294_v46 }
 0x2aa   :  { %v420_v47 = vpop.eup %419 }
 0x2ab   :  { %298 = vst.msk [vmem:[#allocation2] sm:$0xff] %vm297_vm4, %v420_v47 }
 0x2ac   :  { %432 = shalt.err (!%p429_p4)
}
 0x2ad   :  { %s433_s19 = scalar_lea.hbm %s577_s7, 128 }
 0x2ae   :  { %p434_p5 = scmp.ne.s32.totalorder %s577_s7, %s433_s19  ;;  %p437_p6 = scmp.lt.u32.totalorder %s433_s19, %s577_s7 }
 0x2b0   :  { %p439_p7 = pnand %p437_p6, %p434_p5 }
 0x2b2   :  { %442 = shalt.err (!%p439_p7)
}
 0x2b3   :  { %308 = dma.vmem_to_hbm [thread:$0]  %s306_s4, 128, %s577_s7, [#allocation3]  }
 0x2b4   :  { %443 = dma.done.wait [#allocation3], 128  }
 0x2b5   :  { %444 = vsyncadd [#allocation3], 4294967168 }
 0x2b6   :  { %312 = vsyncpa [#allocation3], 1 }

</bundles_post_ra>
